<compile_context>
chip_gen: v7x
topology: tpu7x:2x2x1
jax: 0.10.0
libtpu: 0.0.40
codegen_flags: <defaults>
</compile_context>

<pallas_src>
import functools

import jax
import jax.numpy as jnp
from jax.experimental import pallas as pl
from jax.experimental.pallas import tpu as pltpu


def _round_up(x, m):
    return (x + m - 1) // m * m


def _integrator_kernel(x_ref, band_ref, o_ref, *acc, nb, precision):
    # x_ref:    (row_tile, Tt)      input time-tile  i = j - (nb-1) + k
    # band_ref: (nb, Tt, Tt)        all band blocks, VMEM-resident
    # o_ref:    (row_tile, Tt)      output time-tile j (resident across k)
    # acc:      optional (row_tile, Tt) f32 scratch (only when o_ref is not f32)
    acc_ref = acc[0] if acc else o_ref

    j = pl.program_id(1)
    k = pl.program_id(2)
    i = j - (nb - 1) + k                    # input time-tile index (may be < 0)
    first_k = jnp.maximum(nb - 1 - j, 0)    # smallest k whose input tile exists

    @pl.when(i >= 0)
    def _():
        contrib = jnp.dot(
            x_ref[...],
            band_ref[nb - 1 - k],           # band block for offset d = j - i
            preferred_element_type=jnp.float32,
            precision=precision,
        )

        @pl.when(k == first_k)              # first contribution: plain store
        def _():
            acc_ref[...] = contrib

        @pl.when(k > first_k)               # later contributions: accumulate
        def _():
            acc_ref[...] += contrib

    if acc:                                 # non-f32 epilogue: single cast/store
        @pl.when(k == nb - 1)
        def _():
            o_ref[...] = acc_ref[...].astype(o_ref.dtype)


def integrator(x, time_steps, *, row_tile=None, t_tile=None):
    """Causal all-ones depthwise conv1d (velocity integrator).

    Args:
      x: (N, C, T) array.
      time_steps: integrator window K (conv kernel_size).
      row_tile / t_tile: optional tile-size overrides.
    Returns:
      (N, C, T) array, same dtype as x.
    """
    N, C, T = x.shape
    K = int(time_steps)
    rows = N * C

    orig_dtype = x.dtype
    if not jnp.issubdtype(orig_dtype, jnp.floating):
        # Integer inputs computed via f32: exact while window sums stay < 2^24.
        x = x.astype(jnp.float32)
    x2 = x.reshape(rows, T)
    itemsize = jnp.dtype(x2.dtype).itemsize
    sub = max(8, 32 // itemsize)            # sublane alignment: 8 f32 / 16 bf16

    # Time tile: tied to K (wasted MXU MACs scale with t_tile, only K are
    # useful), clamped to [128, 512], never larger than the 128-padded T.
    if t_tile is None:
        t_tile = max(128, min(512, _round_up(K, 128)))
        t_tile = min(t_tile, _round_up(T, 128))
    Tpad = _round_up(T, t_tile)
    nt = Tpad // t_tile

    # Row tile: tall (up to 512) to amortize per-step overhead and the MXU RHS
    # push.  If the parallel grid (nr x nt) would collapse to one step, split
    # rows so v7x megacore has >= 2 shardable steps.
    if row_tile is None:
        row_tile = min(512, _round_up(rows, sub))
        if nt * ((rows + row_tile - 1) // row_tile) < 2 and rows >= 2 * sub:
            row_tile = _round_up((rows + 1) // 2, sub)
    Rpad = _round_up(rows, row_tile)
    nr = Rpad // row_tile

    if (Rpad, Tpad) != (rows, T):
        x2 = jnp.pad(x2, ((0, Rpad - rows), (0, Tpad - T)))

    # Number of input time-tiles overlapping one output time-tile's window.
    nb = min(nt, (K - 1 + t_tile - 1) // t_tile + 1)

    # Band blocks, built once on the host.  band[d, a, b] = 1 iff source index
    # (i*Tt + a) lies in the causal window of output (j*Tt + b), with d = j - i,
    # i.e. 0 <= d*Tt + b - a <= K-1.  0/1 values are exact in bf16.
    a_idx = jnp.arange(t_tile, dtype=jnp.int32)[None, :, None]
    b_idx = jnp.arange(t_tile, dtype=jnp.int32)[None, None, :]
    d_idx = jnp.arange(nb, dtype=jnp.int32)[:, None, None]
    delta = d_idx * t_tile + b_idx - a_idx
    band = jnp.logical_and(delta >= 0, delta < K).astype(x2.dtype)

    # f32 inputs: force the full-precision MXU contraction so x is never
    # demoted to a single bf16 pass.  bf16 inputs take the native path.
    precision = jax.lax.Precision.HIGHEST if x2.dtype == jnp.float32 else None
    # f32 outputs accumulate directly into the resident output block; other
    # dtypes get an f32 scratch accumulator.
    use_scratch = x2.dtype != jnp.float32

    kernel = functools.partial(_integrator_kernel, nb=nb, precision=precision)

    out2 = pl.pallas_call(
        kernel,
        out_shape=jax.ShapeDtypeStruct((Rpad, Tpad), x2.dtype),
        grid_spec=pltpu.PrefetchScalarGridSpec(
            num_scalar_prefetch=0,
            grid=(nr, nt, nb),
            in_specs=[
                # x: input time-tile i = j - (nb-1) + k.  Negative i is gated in
                # the kernel; the clamped index 0 equals the block a later k
                # needs, so the early fetch is reused (same-index DMA dedup),
                # not wasted.
                pl.BlockSpec(
                    (row_tile, t_tile),
                    lambda r, j, k: (r, jnp.maximum(j - (nb - 1) + k, 0)),
                ),
                # band: whole block-Toeplitz table resident in VMEM (constant
                # index_map => DMAed once, never re-fetched per grid step).
                pl.BlockSpec((nb, t_tile, t_tile), lambda r, j, k: (0, 0, 0)),
            ],
            out_specs=pl.BlockSpec((row_tile, t_tile), lambda r, j, k: (r, j)),
            scratch_shapes=(
                [pltpu.VMEM((row_tile, t_tile), jnp.float32)]
                if use_scratch
                else []
            ),
        ),
        compiler_params=pltpu.CompilerParams(
            dimension_semantics=("parallel", "parallel", "arbitrary"),
            # Generous scoped-VMEM cap (< v7x's 64 MiB physical): resident band
            # + double-buffered x/out tiles stay well under this for any
            # reasonable K / tile configuration.
            vmem_limit_bytes=48 * 1024 * 1024,
        ),
    )(x2, band)

    out = out2[:rows, :T].reshape(N, C, T)
    if out.dtype != orig_dtype:
        out = out.astype(orig_dtype)
    return out


def _reference(x, time_steps):
    # Pure-JAX reference: causal sliding-window sum of width K via cumsum trick.
    cs = jnp.cumsum(x.astype(jnp.float32), axis=-1)
    shifted = jnp.pad(cs, ((0, 0), (0, 0), (time_steps, 0)))[..., : x.shape[-1]]
    return (cs - shifted).astype(x.dtype)


if __name__ == "__main__":
    key = jax.random.PRNGKey(0)

    # Small shapes consistent with the module: batch=2, channels=4, T=16, K=8.
    N, C, T = 2, 4, 16
    time_steps = 8
    x = jax.random.normal(key, (N, C, T), dtype=jnp.float32)
    out = jax.block_until_ready(integrator(x, time_steps))
    ref = _reference(x, time_steps)
    assert out.shape == (N, C, T)
    assert jnp.allclose(out, ref, atol=1e-5, rtol=1e-5), "mismatch (f32, single tile)"

    # Multi-time-tile path with a window spanning several tiles (nt=3, nb=3).
    x2 = jax.random.normal(jax.random.PRNGKey(1), (2, 4, 300), dtype=jnp.float32)
    out2 = jax.block_until_ready(integrator(x2, 200, t_tile=128))
    ref2 = _reference(x2, 200)
    assert jnp.allclose(out2, ref2, atol=1e-3, rtol=1e-3), "mismatch (f32, tiled path)"

    # bf16 path (f32 scratch accumulator, native bf16 MXU operands).
    x3 = jax.random.normal(jax.random.PRNGKey(2), (2, 4, 300), dtype=jnp.bfloat16)
    out3 = jax.block_until_ready(integrator(x3, 40, t_tile=128))
    ref3 = _reference(x3, 40)
    assert jnp.allclose(
        out3.astype(jnp.float32), ref3.astype(jnp.float32), atol=5e-2, rtol=5e-2
    ), "mismatch (bf16 path)"

    print("KERNEL_OK")
</pallas_src>

<mosaic_0001>
module attributes {stable_mosaic.version = 11 : i64} {
  func.func @_integrator_kernel(%arg0: i32, %arg1: i32, %arg2: i32, %arg3: memref<8x128xf32, #tpu.memory_space<vmem>>, %arg4: memref<1x128x128xf32, #tpu.memory_space<vmem>>, %arg5: memref<8x128xf32, #tpu.memory_space<vmem>>) attributes {dimension_semantics = [#tpu.dimension_semantics<parallel>, #tpu.dimension_semantics<parallel>, #tpu.dimension_semantics<arbitrary>], iteration_bounds = array<i64: 1, 1, 1>, scalar_prefetch = 0 : i64, scratch_operands = 0 : i64, tpu.core_type = #tpu.core_type<tc>, window_params = [{transform_indices = @transform_0, window_bounds = array<i64: 8, 128>}, {pipeline_mode = #tpu.pipeline_mode<synchronous>, transform_indices = @transform_1, window_bounds = array<i64: 1, 128, 128>}, {transform_indices = @transform_2, window_bounds = array<i64: 8, 128>}]} {
    %c0_i32 = arith.constant 0 : i32
    %0 = arith.subi %arg1, %c0_i32 : i32
    %1 = arith.addi %0, %arg2 : i32
    %c0_i32_0 = arith.constant 0 : i32
    %2 = arith.subi %c0_i32_0, %arg1 : i32
    %c0_i32_1 = arith.constant 0 : i32
    %3 = arith.maxsi %2, %c0_i32_1 : i32
    %c0_i32_2 = arith.constant 0 : i32
    %4 = arith.cmpi sge, %1, %c0_i32_2 : i32
    %5 = arith.extui %4 : i1 to i32
    %c0_i32_3 = arith.constant 0 : i32
    %6 = arith.cmpi ne, %5, %c0_i32_3 : i32
    scf.if %6 {
      %c0 = arith.constant 0 : index
      %c0_4 = arith.constant 0 : index
      %7 = vector.load %arg3[%c0, %c0_4] : memref<8x128xf32, #tpu.memory_space<vmem>>, vector<8x128xf32>
      %c0_i32_5 = arith.constant 0 : i32
      %8 = arith.subi %c0_i32_5, %arg2 : i32
      %9 = arith.index_cast %8 : i32 to index
      %c0_6 = arith.constant 0 : index
      %c0_7 = arith.constant 0 : index
      %10 = vector.load %arg4[%9, %c0_6, %c0_7] : memref<1x128x128xf32, #tpu.memory_space<vmem>>, vector<1x128x128xf32>
      %11 = vector.shape_cast %10 : vector<1x128x128xf32> to vector<128x128xf32>
      %cst = arith.constant dense<0.000000e+00> : vector<8x128xf32>
      %12 = tpu.matmul %7, %11, %cst {dimension_numbers = #tpu.dot_dimension_numbers<[1], [0], [0], [1], [0, 0, 1, 1], [], []>, precision = #tpu.contract_precision<fp32>} : vector<8x128xf32>, vector<128x128xf32>, vector<8x128xf32> -> vector<8x128xf32>
      %13 = arith.cmpi eq, %arg2, %3 : i32
      %14 = arith.extui %13 : i1 to i32
      %c0_i32_8 = arith.constant 0 : i32
      %15 = arith.cmpi ne, %14, %c0_i32_8 : i32
      scf.if %15 {
        %c0_10 = arith.constant 0 : index
        %c0_11 = arith.constant 0 : index
        %19 = vector.load %arg5[%c0_10, %c0_11] : memref<8x128xf32, #tpu.memory_space<vmem>>, vector<8x128xf32>
        tpu.vector_store %arg5[%c0_10, %c0_11], %12 {strides = array<i32>} : memref<8x128xf32, #tpu.memory_space<vmem>>, vector<8x128xf32>,
      } else {
      }
      %16 = arith.cmpi sgt, %arg2, %3 : i32
      %17 = arith.extui %16 : i1 to i32
      %c0_i32_9 = arith.constant 0 : i32
      %18 = arith.cmpi ne, %17, %c0_i32_9 : i32
      scf.if %18 {
        %c0_10 = arith.constant 0 : index
        %c0_11 = arith.constant 0 : index
        %19 = vector.load %arg5[%c0_10, %c0_11] : memref<8x128xf32, #tpu.memory_space<vmem>>, vector<8x128xf32>
        %20 = arith.addf %19, %12 : vector<8x128xf32>
        %c0_12 = arith.constant 0 : index
        %c0_13 = arith.constant 0 : index
        %21 = vector.load %arg5[%c0_12, %c0_13] : memref<8x128xf32, #tpu.memory_space<vmem>>, vector<8x128xf32>
        tpu.vector_store %arg5[%c0_12, %c0_13], %20 {strides = array<i32>} : memref<8x128xf32, #tpu.memory_space<vmem>>, vector<8x128xf32>,
      } else {
      }
    } else {
    }
    return
  }
  func.func @transform_0(%arg0: i32, %arg1: i32, %arg2: i32) -> (i32, i32) {
    %c0_i32 = arith.constant 0 : i32
    %0 = arith.subi %arg1, %c0_i32 : i32
    %1 = arith.addi %0, %arg2 : i32
    %c0_i32_0 = arith.constant 0 : i32
    %2 = arith.maxsi %1, %c0_i32_0 : i32
    %c0_i32_1 = arith.constant 0 : i32
    return %arg0, %2 : i32, i32
  }
  func.func @transform_1(%arg0: i32, %arg1: i32, %arg2: i32) -> (i32, i32, i32) {
    %c0_i32 = arith.constant 0 : i32
    %c0_i32_0 = arith.constant 0 : i32
    %c0_i32_1 = arith.constant 0 : i32
    %c0_i32_2 = arith.constant 0 : i32
    return %c0_i32, %c0_i32_0, %c0_i32_1 : i32, i32, i32
  }
  func.func @transform_2(%arg0: i32, %arg1: i32, %arg2: i32) -> (i32, i32) {
    %c0_i32 = arith.constant 0 : i32
    return %arg0, %arg1 : i32, i32
  }
}

</mosaic_0001>

<bundles_post_ra>
// kernel: tpu_custom_call.1
= control target key start
LH: loop header
LB: loop body
LE: loop exit
PB: predicated region body
PF: predicated region fallthrough
CT: control target
= control target key end

     0   :  { %7 = vsyncpa [#allocation3], 0  ;;  %s1605_s0 = inlined_call_operand.hbm [shape: f32[8,128], index: 0, kind: input, shape index: {}]   ;;  %s1606_s1 = inlined_call_operand.hbm [shape: f32[1,128,128], index: 1, kind: input, shape index: {}]   ;;  %s1607_s2 = inlined_call_operand.hbm [shape: f32[8,128], index: 2, kind: output, shape index: {}]  }
   0x1   :  { %8 = vsyncpa [#allocation6], 0 }
   0x2   :  { %9 = vsyncpa [#allocation4], 0  ;;  %s1292_s9 = smov [#allocation2]   ;;  %s1293_s11 = smov [#allocation5]  }
   0x3   :  { %s21_s10 = sshll.u32 %s1292_s9, 4  ;;  %s30_s12 = sshll.u32 %s1293_s11, 4  ;;  %s22_s10 = int_to_ptr.vmem [resolvable:$true] %s21_s10  ;;  %s1315_s12 = int_to_ptr.vmem [resolvable:$true] %s30_s12 }
   0x4   :  { %s1220_s15 = scalar_lea.hbm %s1605_s0, 128 }
   0x5   :  { %p1221_p0 = scmp.ne.s32.totalorder %s1605_s0, %s1220_s15  ;;  %p1224_p1 = scmp.lt.u32.totalorder %s1220_s15, %s1605_s0 }
   0x7   :  { %p1226_p2 = pnand %p1224_p1, %p1221_p0 }
   0x9   :  { %1229 = shalt.err (!%p1226_p2)
}
   0xa   :  { %s1230_s20 = scalar_lea.vmem %s22_s10, 128  ;;  %p1235_p4 = scmp.lt.s32.totalorder %s22_s10, %s22_s10 }
   0xb   :  { %p1231_p3 = scmp.ne.s32.totalorder %s22_s10, %s1230_s20  ;;  %p1236_p5 = scmp.lt.s32.totalorder %s1230_s20, %s1230_s20 }
   0xd   :  { %p1237_p6 = por %p1236_p5, %p1235_p4 }
   0xf   :  { %p1238_p7 = pnand %p1237_p6, %p1231_p3 }
  0x11   :  { %1241 = shalt.err (!%p1238_p7)
}
  0x12   :  { %24 = dma.hbm_to_vmem [thread:$0]  %s1605_s0, 128, %s22_s10, [#allocation3]  }
  0x13   :  { %s1242_s25 = scalar_lea.hbm %s1606_s1, 2048 }
  0x14   :  { %p1243_p8 = scmp.ne.s32.totalorder %s1606_s1, %s1242_s25  ;;  %p1246_p9 = scmp.lt.u32.totalorder %s1242_s25, %s1606_s1 }
  0x16   :  { %p1248_p10 = pnand %p1246_p9, %p1243_p8 }
  0x18   :  { %1251 = shalt.err (!%p1248_p10)
}
  0x19   :  { %s1252_s30 = scalar_lea.vmem %s1315_s12, 2048  ;;  %p1257_p12 = scmp.lt.s32.totalorder %s1315_s12, %s1315_s12 }
  0x1a   :  { %p1253_p11 = scmp.ne.s32.totalorder %s1315_s12, %s1252_s30  ;;  %p1258_p13 = scmp.lt.s32.totalorder %s1252_s30, %s1252_s30 }
  0x1c   :  { %p1259_p0 = por %p1258_p13, %p1257_p12 }
  0x1e   :  { %p1260_p1 = pnand %p1259_p0, %p1253_p11 }
  0x20   :  { %1263 = shalt.err (!%p1260_p1)
}
  0x21   :  { %s1294_s0 = smov 128   ;;  %s1295_s3 = smov 8  }
  0x22   :  { %36 = dma.hbm_to_vmem [thread:$0]  %s1606_s1, 2048, %s1315_s12, [#allocation6], %s1294_s0, %s1294_s0, %s1295_s3  }
  0x23   :  { %1286 = dma.done.wait [#allocation3], 128  }
  0x24   :  { %1287 = vsyncadd [#allocation3], 4294967168 }
  0x25   :  { %1288 = dma.done.wait [#allocation6], 2048  }
  0x26   :  { %1289 = vsyncadd [#allocation6], 4294965248  ;;  %v1296_v0 = vmov 0.0|0.0   ;;  %vm1297_vm0 = vmmov 0   ;;  %v1298_v1 = vmov 0.0   ;;  %v58_v2 = vld [vmem:[#allocation5] sm:$0xff] }
  0x27   :  { %1059 = vmatprep.subr.bf16.mxu1 %v1296_v0  ;;  %1131 = vmatprep.subr.bf16.mxu0 %v1296_v0  ;;  %v59_v3 = vld [vmem:[#allocation5 + $0x8] sm:$0xff]  ;;  %v60_v4 = vld [vmem:[#allocation5 + $0x10] sm:$0xff]  ;;  %v75_v5 = vand.u32 4294901760, %v58_v2  ;;  %v61_v7 = vld [vmem:[#allocation5 + $0x18] sm:$0xff]  ;;  %s1299_s1 = smov [#allocation7]  }
  0x28   :  { %881 = vmatprep.mubr.msk.f32.mxu1 %vm1297_vm0, %v1298_v1  ;;  %986 = vmatprep.mubr.msk.f32.mxu0 %vm1297_vm0, %v1298_v1  ;;  %v78_v6 = vand.u32 4294901760, %v59_v3  ;;  %v81_v8 = vand.u32 4294901760, %v60_v4  ;;  %v84_v9 = vand.u32 4294901760, %v61_v7  ;;  %v62_v10 = vld [vmem:[#allocation5 + $0x20] sm:$0xff]  ;;  %v63_v11 = vld [vmem:[#allocation5 + $0x28] sm:$0xff]  ;;  %v64_v16 = vld [vmem:[#allocation5 + $0x30] sm:$0xff] }
  0x29   :  { %v87_v14 = vand.u32 4294901760, %v62_v10  ;;  %v90_v15 = vand.u32 4294901760, %v63_v11  ;;  %v65_v17 = vld [vmem:[#allocation5 + $0x38] sm:$0xff]  ;;  %v93_v19 = vand.u32 4294901760, %v64_v16  ;;  %v1366_v21 = vld [vmem:[#allocation5 + $0x40] sm:$0xff]  ;;  %v1368_v22 = vld [vmem:[#allocation5 + $0x48] sm:$0xff]  ;;  %v1382_v29 = vsub.f32 %v58_v2, %v75_v5 }
  0x2a   :  { %v1352_v12 = vpack.c.bf16 %v78_v6, %v75_v5  ;;  %v1356_v13 = vpack.c.bf16 %v84_v9, %v81_v8  ;;  %v96_v20 = vand.u32 4294901760, %v65_v17  ;;  %v99_v24 = vand.u32 4294901760, %v1366_v21  ;;  %v54_v26 = vld [vmem:[#allocation2] sm:$0xff]  ;;  %v1378_v27 = vld [vmem:[#allocation5 + $0x50] sm:$0xff]  ;;  %v1394_v35 = vld [vmem:[#allocation5 + $0x60] sm:$0xff]  ;;  %s733_s6 = sshll.u32 %s1299_s1, 4  ;;  %s734_s6 = int_to_ptr.vmem [resolvable:$true] %s733_s6 }
  0x2b   :  { %v1362_v18 = vpack.c.bf16 %v90_v15, %v87_v14  ;;  %v102_v25 = vand.u32 4294901760, %v1368_v22  ;;  %v1380_v28 = vld [vmem:[#allocation5 + $0x58] sm:$0xff]  ;;  %v1384_v30 = vand.u32 4294901760, %v54_v26  ;;  %v1386_v31 = vsub.f32 %v59_v3, %v78_v6  ;;  %v1398_v36 = vld [vmem:[#allocation5 + $0x68] sm:$0xff]  ;;  %v1417_v43 = vld [vmem:[#allocation5 + $0x70] sm:$0xff]  ;;  %s1264_s7 = scalar_lea.vmem %s734_s6, 128  ;;  %p1269_p3 = scmp.lt.s32.totalorder %s734_s6, %s734_s6 }
  0x2c   :  { %1061 = vmatpush3.bf16.msra.mxu1 %v1352_v12  ;;  %1133 = vmatpush3.bf16.msra.mxu0 %v1352_v12  ;;  %v1372_v23 = vpack.c.bf16 %v96_v20, %v93_v19  ;;  %v105_v33 = vand.u32 4294901760, %v1378_v27  ;;  %v108_v34 = vand.u32 4294901760, %v1380_v28  ;;  %v1400_v37 = vsub.f32 %v60_v4, %v81_v8  ;;  %v1419_v44 = vld [vmem:[#allocation5 + $0x78] sm:$0xff]  ;;  %p1265_p2 = scmp.ne.s32.totalorder %s734_s6, %s1264_s7  ;;  %p1270_p4 = scmp.lt.s32.totalorder %s1264_s7, %s1264_s7 }
  0x2d   :  { %1062 = vmatprep.subr.bf16.mxu1 %v1296_v0  ;;  %1134 = vmatprep.subr.bf16.mxu0 %v1296_v0  ;;  %v1390_v32 = vpack.c.bf16 %v102_v25, %v99_v24  ;;  %v1402_v38 = vsub.f32 %v61_v7, %v84_v9  ;;  %v111_v39 = vand.u32 4294901760, %v1394_v35  ;;  %v1406_v40 = vsub.f32 %v54_v26, %v1384_v30 }
  0x2e   :  { %v1414_v41 = vpack.c.bf16 %v108_v34, %v105_v33  ;;  %v114_v42 = vand.u32 4294901760, %v1398_v36  ;;  %v168_v45 = vand.u32 4294901760, %v1382_v29  ;;  %v175_v46 = vand.u32 4294901760, %v1386_v31  ;;  %p1271_p5 = por %p1270_p4, %p1269_p3 }
  0x2f   :  { %v1425_v47 = vsub.f32 %v62_v10, %v87_v14  ;;  %v1427_v48 = vsub.f32 %v63_v11, %v90_v15  ;;  %v117_v49 = vand.u32 4294901760, %v1417_v43  ;;  %v120_v50 = vand.u32 4294901760, %v1419_v44 }
  0x30   :  { %1064 = vmatpush3.bf16.msra.mxu1 %v1356_v13  ;;  %1136 = vmatpush3.bf16.msra.mxu0 %v1356_v13  ;;  %v157_v51 = vand.u32 4294901760, %v1406_v40  ;;  %v182_v52 = vand.u32 4294901760, %v1400_v37  ;;  %v1439_v53 = vpack.c.bf16 %v114_v42, %v111_v39  ;;  %v169_v54 = vsub.f32 %v1382_v29, %v168_v45  ;;  %p1272_p6 = pnand %p1271_p5, %p1265_p2 }
  0x31   :  { %1065 = vmatprep.subr.bf16.mxu1 %v1296_v0  ;;  %1137 = vmatprep.subr.bf16.mxu0 %v1296_v0  ;;  %v176_v55 = vsub.f32 %v1386_v31, %v175_v46  ;;  %v189_v56 = vand.u32 4294901760, %v1402_v38  ;;  %v1446_v57 = vsub.f32 %v64_v16, %v93_v19  ;;  %v1448_v58 = vsub.f32 %v65_v17, %v96_v20 }
  0x32   :  { %v158_v59 = vsub.f32 %v1406_v40, %v157_v51  ;;  %v183_v60 = vsub.f32 %v1400_v37, %v182_v52  ;;  %v196_v61 = vand.u32 4294901760, %v1425_v47  ;;  %v203_v62 = vand.u32 4294901760, %v1427_v48 }
  0x33   :  { %v1460_v63 = vpack.c.bf16 %v120_v50, %v117_v49  ;;  %v170_v2 = vand.u32 4294901760, %v169_v54  ;;  %v177_v3 = vand.u32 4294901760, %v176_v55  ;;  %v190_v4 = vsub.f32 %v1402_v38, %v189_v56 }
  0x34   :  { %1067 = vmatpush3.bf16.msra.mxu1 %v1362_v18  ;;  %1139 = vmatpush3.bf16.msra.mxu0 %v1362_v18  ;;  %v1466_v5 = vsub.f32 %v1366_v21, %v99_v24  ;;  %v1469_v6 = vsub.f32 %v1368_v22, %v102_v25  ;;  %v1156_v7 = vpack.c.bf16 %v175_v46, %v168_v45  ;;  %v159_v8 = vand.u32 4294901760, %v158_v59 }
  0x35   :  { %1068 = vmatprep.subr.bf16.mxu1 %v1296_v0  ;;  %1140 = vmatprep.subr.bf16.mxu0 %v1296_v0  ;;  %v184_v9 = vand.u32 4294901760, %v183_v60  ;;  %v197_v10 = vsub.f32 %v1425_v47, %v196_v61  ;;  %v204_v11 = vsub.f32 %v1427_v48, %v203_v62  ;;  %v1084_v14 = vpack.c.bf16 %v177_v3, %v170_v2 }
  0x36   :  { %v191_v15 = vand.u32 4294901760, %v190_v4  ;;  %v210_v16 = vand.u32 4294901760, %v1446_v57  ;;  %v217_v17 = vand.u32 4294901760, %v1448_v58  ;;  %v1482_v19 = vsub.f32 %v1378_v27, %v105_v33 }
  0x37   :  { %v1487_v20 = vsub.f32 %v1380_v28, %v108_v34  ;;  %v1159_v21 = vpack.c.bf16 %v189_v56, %v182_v52  ;;  %v198_v22 = vand.u32 4294901760, %v197_v10  ;;  %v205_v24 = vand.u32 4294901760, %v204_v11 }
  0x38   :  { %1070 = vmatpush3.bf16.msra.mxu1 %v1372_v23  ;;  %1142 = vmatpush3.bf16.msra.mxu0 %v1372_v23  ;;  %v224_v25 = vand.u32 4294901760, %v1466_v5  ;;  %v1087_v26 = vpack.c.bf16 %v191_v15, %v184_v9  ;;  %v211_v45 = vsub.f32 %v1446_v57, %v210_v16  ;;  %v218_v27 = vsub.f32 %v1448_v58, %v217_v17 }
  0x39   :  { %1071 = vmatprep.subr.bf16.mxu1 %v1296_v0  ;;  %1143 = vmatprep.subr.bf16.mxu0 %v1296_v0  ;;  %v231_v33 = vand.u32 4294901760, %v1469_v6  ;;  %v1498_v28 = vsub.f32 %v1394_v35, %v111_v39  ;;  %v1503_v34 = vsub.f32 %v1398_v36, %v114_v42  ;;  %v1090_v46 = vpack.c.bf16 %v205_v24, %v198_v22 }
  0x3a   :  { %v225_v52 = vsub.f32 %v1466_v5, %v224_v25  ;;  %v238_v54 = vand.u32 4294901760, %v1482_v19  ;;  %v212_v35 = vand.u32 4294901760, %v211_v45  ;;  %v219_v39 = vand.u32 4294901760, %v218_v27 }
  0x3b   :  { %v232_v55 = vsub.f32 %v1469_v6, %v231_v33  ;;  %v245_v36 = vand.u32 4294901760, %v1487_v20  ;;  %v1518_v42 = vsub.f32 %v1417_v43, %v117_v49  ;;  %v1523_v56 = vsub.f32 %v1419_v44, %v120_v50 }
  0x3c   :  { %1073 = vmatpush3.bf16.msra.mxu1 %v1390_v32  ;;  %1145 = vmatpush3.bf16.msra.mxu0 %v1390_v32  ;;  %v1165_v59 = vpack.c.bf16 %v217_v17, %v210_v16  ;;  %v226_v60 = vand.u32 4294901760, %v225_v52  ;;  %v1093_v2 = vpack.c.bf16 %v219_v39, %v212_v35  ;;  %v259_v43 = vand.u32 4294901760, %v1503_v34 }
  0x3d   :  { %1074 = vmatprep.subr.bf16.mxu1 %v1296_v0  ;;  %1146 = vmatprep.subr.bf16.mxu0 %v1296_v0  ;;  %v233_v3 = vand.u32 4294901760, %v232_v55  ;;  %v246_v4 = vsub.f32 %v1487_v20, %v245_v36  ;;  %v1168_v44 = vpack.c.bf16 %v231_v33, %v224_v25  ;;  %v273_v11 = vand.u32 4294901760, %v1523_v56 }
  0x3e   :  { %v260_v10 = vsub.f32 %v1503_v34, %v259_v43 }
  0x3f   :  { %v247_v9 = vand.u32 4294901760, %v246_v4  ;;  %v274_v22 = vsub.f32 %v1523_v56, %v273_v11 }
  0x40   :  { %1076 = vmatpush3.bf16.msra.mxu1 %v1414_v41  ;;  %1148 = vmatpush3.bf16.msra.mxu0 %v1414_v41  ;;  %v261_v17 = vand.u32 4294901760, %v260_v10 }
  0x41   :  { %1077 = vmatprep.subr.bf16.mxu1 %v1296_v0  ;;  %1149 = vmatprep.subr.bf16.mxu0 %v1296_v0  ;;  %v275_v45 = vand.u32 4294901760, %v274_v22 }
  0x44   :  { %1079 = vmatpush3.bf16.msra.mxu1 %v1439_v53  ;;  %1151 = vmatpush3.bf16.msra.mxu0 %v1439_v53 }
  0x45   :  { %1080 = vmatprep.subr.bf16.mxu1 %v1296_v0  ;;  %1152 = vmatprep.subr.bf16.mxu0 %v1296_v0 }
  0x48   :  { %1082 = vmatpush3.bf16.msra.mxu1 %v1460_v63  ;;  %1154 = vmatpush3.bf16.msra.mxu0 %v1460_v63 }
  0x49   :  { %1083 = vmatprep.subr.bf16.mxu1 %v1296_v0  ;;  %1155 = vmatprep.subr.bf16.mxu0 %v1296_v0 }
  0x4b   :  { %882 = vmatmul.mubr.f32.vlgmr.msra.gmra.mrb[0].mxu1 %v159_v8  ;;  %987 = vmatmul.mubr.f32.vlgmr.msra.gmra.mrb[0].mxu0 %v157_v51  ;;  %v1162_v51 = vpack.c.bf16 %v203_v62, %v196_v61  ;;  %v239_v61 = vsub.f32 %v1482_v19, %v238_v54  ;;  %v252_v62 = vand.u32 4294901760, %v1498_v28  ;;  %v1096_v8 = vpack.c.bf16 %v233_v3, %v226_v60 }
  0x4c   :  { %1085 = vmatpush3.bf16.msra.mxu1 %v1084_v14  ;;  %1157 = vmatpush3.bf16.msra.mxu0 %v1156_v7  ;;  %v266_v7 = vand.u32 4294901760, %v1518_v42  ;;  %v1171_v14 = vpack.c.bf16 %v245_v36, %v238_v54 }
  0x4d   :  { %1086 = vmatprep.subr.bf16.mxu1 %v1296_v0  ;;  %1158 = vmatprep.subr.bf16.mxu0 %v1296_v0  ;;  %v240_v49 = vand.u32 4294901760, %v239_v61  ;;  %v253_v50 = vsub.f32 %v1498_v28, %v252_v62  ;;  %v1174_v25 = vpack.c.bf16 %v259_v43, %v252_v62 }
  0x4e   :  { %916 = vmatprep.mubr.msk.f32.mxu1 %vm1297_vm0, %v1298_v1  ;;  %1021 = vmatprep.mubr.msk.f32.mxu0 %vm1297_vm0, %v1298_v1  ;;  %v1177_v33 = vpack.c.bf16 %v273_v11, %v266_v7 }
  0x4f   :  { %v254_v15 = vand.u32 4294901760, %v253_v50  ;;  %v1099_v16 = vpack.c.bf16 %v247_v9, %v240_v49 }
  0x50   :  { %1088 = vmatpush3.bf16.msra.mxu1 %v1087_v26  ;;  %1160 = vmatpush3.bf16.msra.mxu0 %v1159_v21  ;;  %v267_v21 = vsub.f32 %v1518_v42, %v266_v7 }
  0x51   :  { %1089 = vmatprep.subr.bf16.mxu1 %v1296_v0  ;;  %1161 = vmatprep.subr.bf16.mxu0 %v1296_v0  ;;  %v1102_v24 = vpack.c.bf16 %v261_v17, %v254_v15 }
  0x52   :  { %v268_v26 = vand.u32 4294901760, %v267_v21 }
  0x54   :  { %1091 = vmatpush3.bf16.msra.mxu1 %v1090_v46  ;;  %1163 = vmatpush3.bf16.msra.mxu0 %v1162_v51  ;;  %v1105_v27 = vpack.c.bf16 %v275_v45, %v268_v26  ;;  %v1108_v46 = vpack.c.bf16 %v1386_v31, %v1382_v29  ;;  %v1111_v51 = vpack.c.bf16 %v1402_v38, %v1400_v37 }
  0x55   :  { %1092 = vmatprep.subr.bf16.mxu1 %v1296_v0  ;;  %1164 = vmatprep.subr.bf16.mxu0 %v1296_v0  ;;  %v1114_v29 = vpack.c.bf16 %v1427_v48, %v1425_v47 }
  0x58   :  { %1094 = vmatpush3.bf16.msra.mxu1 %v1093_v2  ;;  %1166 = vmatpush3.bf16.msra.mxu0 %v1165_v59 }
  0x59   :  { %1095 = vmatprep.subr.bf16.mxu1 %v1296_v0  ;;  %1167 = vmatprep.subr.bf16.mxu0 %v1296_v0 }
  0x5c   :  { %1097 = vmatpush3.bf16.msra.mxu1 %v1096_v8  ;;  %1169 = vmatpush3.bf16.msra.mxu0 %v1168_v44 }
  0x5d   :  { %1098 = vmatprep.subr.bf16.mxu1 %v1296_v0  ;;  %1170 = vmatprep.subr.bf16.mxu0 %v1296_v0 }
  0x60   :  { %1100 = vmatpush3.bf16.msra.mxu1 %v1099_v16  ;;  %1172 = vmatpush3.bf16.msra.mxu0 %v1171_v14 }
  0x61   :  { %1101 = vmatprep.subr.bf16.mxu1 %v1296_v0  ;;  %1173 = vmatprep.subr.bf16.mxu0 %v1296_v0 }
  0x64   :  { %1103 = vmatpush3.bf16.msra.mxu1 %v1102_v24  ;;  %1175 = vmatpush3.bf16.msra.mxu0 %v1174_v25 }
  0x65   :  { %1104 = vmatprep.subr.bf16.mxu1 %v1296_v0  ;;  %1176 = vmatprep.subr.bf16.mxu0 %v1296_v0 }
  0x68   :  { %1106 = vmatpush3.bf16.msra.mxu1 %v1105_v27  ;;  %1178 = vmatpush3.bf16.msra.mxu0 %v1177_v33 }
  0x69   :  { %1107 = vmatprep.subr.bf16.mxu1 %v1296_v0  ;;  %1179 = vmatprep.subr.bf16.mxu0 %v1296_v0 }
  0x6b   :  { %917 = vmatmul.mubr.f32.vlgmr.msra.gmra.mrb[0].mxu1 %v1384_v30  ;;  %1022 = vmatmul.mubr.f32.vlgmr.msra.gmra.mrb[0].mxu0 %v1384_v30 }
  0x6c   :  { %1109 = vmatpush3.bf16.msra.mxu1 %v1108_v46  ;;  %1181 = vmatpush3.bf16.msra.mxu0 %v1352_v12  ;;  %v1117_v12 = vpack.c.bf16 %v1448_v58, %v1446_v57 }
  0x6d   :  { %1110 = vmatprep.subr.bf16.mxu1 %v1296_v0  ;;  %1182 = vmatprep.subr.bf16.mxu0 %v1296_v0 }
  0x6e   :  { %951 = vmatprep.mubr.msk.f32.mxu1 %vm1297_vm0, %v1298_v1  ;;  %1056 = vmatprep.mubr.msk.f32.mxu0 %vm1297_vm0, %v1298_v1  ;;  %v1120_v1 = vpack.c.bf16 %v1469_v6, %v1466_v5 }
  0x70   :  { %1112 = vmatpush3.bf16.msra.mxu1 %v1111_v51  ;;  %1184 = vmatpush3.bf16.msra.mxu0 %v1356_v13  ;;  %v1123_v13 = vpack.c.bf16 %v1487_v20, %v1482_v19 }
  0x71   :  { %1113 = vmatprep.subr.bf16.mxu1 %v1296_v0  ;;  %1185 = vmatprep.subr.bf16.mxu0 %v1296_v0 }
  0x74   :  { %1115 = vmatpush3.bf16.msra.mxu1 %v1114_v29  ;;  %1187 = vmatpush3.bf16.msra.mxu0 %v1362_v18  ;;  %v1126_v18 = vpack.c.bf16 %v1503_v34, %v1498_v28 }
  0x75   :  { %1116 = vmatprep.subr.bf16.mxu1 %v1296_v0  ;;  %1188 = vmatprep.subr.bf16.mxu0 %v1296_v0 }
  0x78   :  { %1118 = vmatpush3.bf16.msra.mxu1 %v1117_v12  ;;  %1190 = vmatpush3.bf16.msra.mxu0 %v1372_v23  ;;  %v1129_v23 = vpack.c.bf16 %v1523_v56, %v1518_v42 }
  0x79   :  { %1119 = vmatprep.subr.bf16.mxu1 %v1296_v0  ;;  %1191 = vmatprep.subr.bf16.mxu0 %v1296_v0 }
  0x7c   :  { %1121 = vmatpush3.bf16.msra.mxu1 %v1120_v1  ;;  %1193 = vmatpush3.bf16.msra.mxu0 %v1390_v32 }
  0x7d   :  { %1122 = vmatprep.subr.bf16.mxu1 %v1296_v0  ;;  %1194 = vmatprep.subr.bf16.mxu0 %v1296_v0 }
  0x80   :  { %1124 = vmatpush3.bf16.msra.mxu1 %v1123_v13  ;;  %1196 = vmatpush3.bf16.msra.mxu0 %v1414_v41 }
  0x81   :  { %1125 = vmatprep.subr.bf16.mxu1 %v1296_v0  ;;  %1197 = vmatprep.subr.bf16.mxu0 %v1296_v0 }
  0x84   :  { %1127 = vmatpush3.bf16.msra.mxu1 %v1126_v18  ;;  %1199 = vmatpush3.bf16.msra.mxu0 %v1439_v53 }
  0x85   :  { %1128 = vmatprep.subr.bf16.mxu1 %v1296_v0  ;;  %1200 = vmatprep.subr.bf16.mxu0 %v1296_v0 }
  0x88   :  { %1130 = vmatpush3.bf16.msra.mxu1 %v1129_v23  ;;  %1202 = vmatpush3.bf16.msra.mxu0 %v1460_v63 }
  0x8b   :  { %952 = vmatmul.mubr.f32.vlgmr.msra.gmra.mrb[0].mxu1 %v1406_v40  ;;  %1057 = vmatmul.mubr.f32.vlgmr.msra.gmra.mrb[0].mxu0 %v1384_v30 }
 0x15e   :  { %v416_v31 = vpop.f32.mrb[0].mxu1  ;;  %v711_v32 = vpop.f32.mrb[0].mxu0 }
 0x15f   :  { %v1203_v37 = vadd.f32 %v711_v32, %v416_v31  ;;  %v953_v38 = vpop.f32.mrb[1].mxu1  ;;  %v1058_v41 = vpop.f32.mrb[1].mxu0 }
 0x161   :  { %719 = vst [vmem:[#allocation7] sm:$0xff] %v1203_v37 }
 0x162   :  { %1275 = shalt.err (!%p1272_p6)
}
 0x163   :  { %s1276_s10 = scalar_lea.hbm %s1607_s2, 128 }
 0x164   :  { %p1277_p7 = scmp.ne.s32.totalorder %s1607_s2, %s1276_s10  ;;  %p1280_p8 = scmp.lt.u32.totalorder %s1276_s10, %s1607_s2 }
 0x166   :  { %p1282_p9 = pnand %p1280_p8, %p1277_p7 }
 0x168   :  { %1285 = shalt.err (!%p1282_p9)
}
 0x169   :  { %736 = dma.vmem_to_hbm [thread:$0]  %s734_s6, 128, %s1607_s2, [#allocation4]  }
 0x16a   :  { %1290 = dma.done.wait [#allocation4], 128  }
 0x16b   :  { %1291 = vsyncadd [#allocation4], 4294967168 }
 0x16c   :  { %740 = vsyncpa [#allocation3], 1 }
 0x16d   :  { %741 = vsyncpa [#allocation6], 1 }
 0x16e   :  { %742 = vsyncpa [#allocation4], 1 }

</bundles_post_ra>
